<compile_context>
chip_gen: v5e
topology: v5e:2x2
jax: 0.10.0
libtpu: 0.0.40
codegen_flags: <defaults>
</compile_context>

<pallas_src>
import jax
import jax.numpy as jnp
import numpy as np
from jax.experimental import pallas as pl
from jax.experimental.pallas import tpu as pltpu


def _make_mae_kernel(acc_rows, fold, width):
    """Kernel closure specialized on the (trace-time) fold geometry."""

    def kernel(pred_ref, gt_ref, sum_ref, cnt_ref):
        # pred_ref / gt_ref : (Hc, W)   (batch & channel dims squeezed)
        # sum_ref           : (1, acc_rows, W) f32   -- per-batch partial sum
        # cnt_ref           : (1, acc_rows, W) i32   -- per-batch partial count
        h = pl.program_id(1)

        @pl.when(h == 0)
        def _():
            sum_ref[...] = jnp.zeros_like(sum_ref)
            cnt_ref[...] = jnp.zeros_like(cnt_ref)

        pred = pred_ref[...].astype(jnp.float32)
        gt = gt_ref[...].astype(jnp.float32)

        mask = gt > 0.0
        err = jnp.where(mask, jnp.abs(pred - gt), 0.0)
        cnt = mask.astype(jnp.int32)

        # Fold (Hc, W) -> (1, acc_rows, W): sublane-aligned regrouping plus a
        # leading-axis sum = plain VPU vreg adds (no cross-lane XLU work).
        err = err.reshape(fold, acc_rows, width).sum(axis=0, keepdims=True)
        cnt = cnt.reshape(fold, acc_rows, width).sum(axis=0, keepdims=True)

        sum_ref[...] += err
        cnt_ref[...] += cnt

    return kernel


def _pick_row_chunk(H, W, itemsize, max_bytes):
    """Largest multiple-of-8 divisor of H whose (rows, W) tile fits max_bytes.

    Falls back to the full plane when H is small, already fits, or is not a
    multiple of 8 (full-extent blocks are always legal).
    """
    if H % 8 != 0 or H * W * itemsize <= max_bytes:
        return H
    best = H
    for c in range(8, H, 8):
        if H % c == 0 and c * W * itemsize <= max_bytes:
            best = c
    return best


def mae_loss(prediction, gt, input=None, epoch=0):
    """Pallas implementation of MAE_loss.forward (input/epoch args unused)."""
    N, C, H, W = prediction.shape

    itemsize = max(jnp.dtype(prediction.dtype).itemsize,
                   jnp.dtype(gt.dtype).itemsize)
    # Smaller chunks when the batch alone gives too few grid steps to keep
    # the DMA pipeline full; larger chunks otherwise (fewer per-step costs).
    max_bytes = (1 << 20) if N <= 2 else (2 << 20)
    Hc = _pick_row_chunk(H, W, itemsize, max_bytes)
    n_chunks = H // Hc

    acc_rows = 8 if Hc % 8 == 0 else Hc
    fold = Hc // acc_rows

    kernel = _make_mae_kernel(acc_rows, fold, W)

    sums, counts = pl.pallas_call(
        kernel,
        out_shape=(
            jax.ShapeDtypeStruct((N, acc_rows, W), jnp.float32),
            jax.ShapeDtypeStruct((N, acc_rows, W), jnp.int32),
        ),
        grid_spec=pltpu.PrefetchScalarGridSpec(
            num_scalar_prefetch=0,
            grid=(N, n_chunks),
            in_specs=[
                # prediction: batch i, channel 0, row-chunk h, full width.
                pl.BlockSpec((None, None, Hc, W), lambda i, h: (i, 0, h, 0)),
                # gt: batch i, its single channel, row-chunk h, full width.
                pl.BlockSpec((None, None, Hc, W), lambda i, h: (i, 0, h, 0)),
            ],
            out_specs=[
                # Per-batch partial accumulators, resident across the h axis.
                pl.BlockSpec((1, acc_rows, W), lambda i, h: (i, 0, 0)),
                pl.BlockSpec((1, acc_rows, W), lambda i, h: (i, 0, 0)),
            ],
        ),
        compiler_params=pltpu.CompilerParams(
            dimension_semantics=("parallel", "arbitrary")),
    )(prediction, gt)

    # Tiny global combine in the wrapper (exact int32 count).
    total = jnp.sum(sums)
    count = jnp.sum(counts)
    return total / count.astype(jnp.float32)


def mae_loss_ref(prediction, gt):
    """Pure-JAX reference mirroring the PyTorch forward."""
    p = prediction[:, 0:1].astype(jnp.float32)
    g = gt.astype(jnp.float32)
    err = jnp.abs(p - g)
    mask = g > 0
    return jnp.sum(jnp.where(mask, err, 0.0)) / jnp.sum(mask)


if __name__ == "__main__":
    key = jax.random.PRNGKey(0)
    k1, k2 = jax.random.split(key)

    N, C, H, W = 2, 4, 16, 16
    prediction = jax.random.normal(k1, (N, C, H, W), dtype=jnp.float32)
    # gt: non-negative with plenty of exact zeros so the mask is non-trivial.
    gt = jax.nn.relu(jax.random.normal(k2, (N, 1, H, W), dtype=jnp.float32))

    loss = mae_loss(prediction, gt)
    loss = jax.block_until_ready(loss)

    ref = jax.block_until_ready(mae_loss_ref(prediction, gt))
    np.testing.assert_allclose(np.asarray(loss), np.asarray(ref),
                               rtol=1e-5, atol=1e-6)

    print("KERNEL_OK")
</pallas_src>

<mosaic_0001>
module attributes {stable_mosaic.version = 11 : i64} {
  func.func @kernel(%arg0: i32, %arg1: i32, %arg2: memref<1x1x16x16xf32, #tpu.memory_space<vmem>>, %arg3: memref<1x1x16x16xf32, #tpu.memory_space<vmem>>, %arg4: memref<1x8x16xf32, #tpu.memory_space<vmem>>, %arg5: memref<1x8x16xi32, #tpu.memory_space<vmem>>) attributes {dimension_semantics = [#tpu.dimension_semantics<parallel>, #tpu.dimension_semantics<arbitrary>], iteration_bounds = array<i64: 2, 1>, scalar_prefetch = 0 : i64, scratch_operands = 0 : i64, tpu.core_type = #tpu.core_type<tc>, window_params = [{transform_indices = @transform_0, window_bounds = array<i64: 1, 1, 16, 16>}, {transform_indices = @transform_1, window_bounds = array<i64: 1, 1, 16, 16>}, {transform_indices = @transform_2, window_bounds = array<i64: 1, 8, 16>}, {transform_indices = @transform_3, window_bounds = array<i64: 1, 8, 16>}]} {
    %c0_i32 = arith.constant 0 : i32
    %0 = arith.cmpi eq, %arg1, %c0_i32 : i32
    %1 = arith.extui %0 : i1 to i32
    %c0_i32_0 = arith.constant 0 : i32
    %2 = arith.cmpi ne, %1, %c0_i32_0 : i32
    scf.if %2 {
      %cst_23 = arith.constant 0.000000e+00 : f32
      %26 = vector.broadcast %cst_23 : f32 to vector<1x8x16xf32>
      %c0_24 = arith.constant 0 : index
      %c0_25 = arith.constant 0 : index
      %c0_26 = arith.constant 0 : index
      %27 = vector.load %arg4[%c0_24, %c0_25, %c0_26] : memref<1x8x16xf32, #tpu.memory_space<vmem>>, vector<1x8x16xf32>
      tpu.vector_store %arg4[%c0_24, %c0_25, %c0_26], %26 {strides = array<i32>} : memref<1x8x16xf32, #tpu.memory_space<vmem>>, vector<1x8x16xf32>,
      %c0_i32_27 = arith.constant 0 : i32
      %28 = vector.broadcast %c0_i32_27 : i32 to vector<1x8x16xi32>
      %c0_28 = arith.constant 0 : index
      %c0_29 = arith.constant 0 : index
      %c0_30 = arith.constant 0 : index
      %29 = vector.load %arg5[%c0_28, %c0_29, %c0_30] : memref<1x8x16xi32, #tpu.memory_space<vmem>>, vector<1x8x16xi32>
      tpu.vector_store %arg5[%c0_28, %c0_29, %c0_30], %28 {strides = array<i32>} : memref<1x8x16xi32, #tpu.memory_space<vmem>>, vector<1x8x16xi32>,
    } else {
    }
    %c0 = arith.constant 0 : index
    %c0_1 = arith.constant 0 : index
    %c0_2 = arith.constant 0 : index
    %c0_3 = arith.constant 0 : index
    %3 = vector.load %arg2[%c0, %c0_1, %c0_2, %c0_3] : memref<1x1x16x16xf32, #tpu.memory_space<vmem>>, vector<1x1x16x16xf32>
    %4 = vector.shape_cast %3 : vector<1x1x16x16xf32> to vector<16x16xf32>
    %c0_4 = arith.constant 0 : index
    %c0_5 = arith.constant 0 : index
    %c0_6 = arith.constant 0 : index
    %c0_7 = arith.constant 0 : index
    %5 = vector.load %arg3[%c0_4, %c0_5, %c0_6, %c0_7] : memref<1x1x16x16xf32, #tpu.memory_space<vmem>>, vector<1x1x16x16xf32>
    %6 = vector.shape_cast %5 : vector<1x1x16x16xf32> to vector<16x16xf32>
    %cst = arith.constant 0.000000e+00 : f32
    %7 = vector.broadcast %cst : f32 to vector<16x16xf32>
    %8 = arith.cmpf ogt, %6, %7 : vector<16x16xf32>
    %9 = arith.subf %4, %6 : vector<16x16xf32>
    %10 = math.absf %9 : vector<16x16xf32>
    %cst_8 = arith.constant 0.000000e+00 : f32
    %11 = vector.broadcast %cst_8 : f32 to vector<16x16xf32>
    %12 = arith.select %8, %10, %11 : vector<16x16xi1>, vector<16x16xf32>
    %13 = arith.extui %8 : vector<16x16xi1> to vector<16x16xi32>
    %14 = vector.shape_cast %12 : vector<16x16xf32> to vector<2x8x16xf32>
    %cst_9 = arith.constant dense<0.000000e+00> : vector<8x16xf32>
    %15 = vector.multi_reduction <add>, %14, %cst_9 [0] : vector<2x8x16xf32> to vector<8x16xf32>
    %16 = vector.shape_cast %15 : vector<8x16xf32> to vector<1x8x16xf32>
    %17 = vector.shape_cast %13 : vector<16x16xi32> to vector<2x8x16xi32>
    %cst_10 = arith.constant dense<0> : vector<8x16xi32>
    %18 = vector.multi_reduction <add>, %17, %cst_10 [0] : vector<2x8x16xi32> to vector<8x16xi32>
    %19 = vector.shape_cast %18 : vector<8x16xi32> to vector<1x8x16xi32>
    %c0_11 = arith.constant 0 : index
    %c0_12 = arith.constant 0 : index
    %c0_13 = arith.constant 0 : index
    %20 = vector.load %arg4[%c0_11, %c0_12, %c0_13] : memref<1x8x16xf32, #tpu.memory_space<vmem>>, vector<1x8x16xf32>
    %21 = arith.addf %20, %16 : vector<1x8x16xf32>
    %c0_14 = arith.constant 0 : index
    %c0_15 = arith.constant 0 : index
    %c0_16 = arith.constant 0 : index
    %22 = vector.load %arg4[%c0_14, %c0_15, %c0_16] : memref<1x8x16xf32, #tpu.memory_space<vmem>>, vector<1x8x16xf32>
    tpu.vector_store %arg4[%c0_14, %c0_15, %c0_16], %21 {strides = array<i32>} : memref<1x8x16xf32, #tpu.memory_space<vmem>>, vector<1x8x16xf32>,
    %c0_17 = arith.constant 0 : index
    %c0_18 = arith.constant 0 : index
    %c0_19 = arith.constant 0 : index
    %23 = vector.load %arg5[%c0_17, %c0_18, %c0_19] : memref<1x8x16xi32, #tpu.memory_space<vmem>>, vector<1x8x16xi32>
    %24 = arith.addi %23, %19 : vector<1x8x16xi32>
    %c0_20 = arith.constant 0 : index
    %c0_21 = arith.constant 0 : index
    %c0_22 = arith.constant 0 : index
    %25 = vector.load %arg5[%c0_20, %c0_21, %c0_22] : memref<1x8x16xi32, #tpu.memory_space<vmem>>, vector<1x8x16xi32>
    tpu.vector_store %arg5[%c0_20, %c0_21, %c0_22], %24 {strides = array<i32>} : memref<1x8x16xi32, #tpu.memory_space<vmem>>, vector<1x8x16xi32>,
    return
  }
  func.func @transform_0(%arg0: i32, %arg1: i32) -> (i32, i32, i32, i32) {
    %c0_i32 = arith.constant 0 : i32
    %c0_i32_0 = arith.constant 0 : i32
    %c0_i32_1 = arith.constant 0 : i32
    return %arg0, %c0_i32, %arg1, %c0_i32_0 : i32, i32, i32, i32
  }
  func.func @transform_1(%arg0: i32, %arg1: i32) -> (i32, i32, i32, i32) {
    %c0_i32 = arith.constant 0 : i32
    %c0_i32_0 = arith.constant 0 : i32
    %c0_i32_1 = arith.constant 0 : i32
    return %arg0, %c0_i32, %arg1, %c0_i32_0 : i32, i32, i32, i32
  }
  func.func @transform_2(%arg0: i32, %arg1: i32) -> (i32, i32, i32) {
    %c0_i32 = arith.constant 0 : i32
    %c0_i32_0 = arith.constant 0 : i32
    %c0_i32_1 = arith.constant 0 : i32
    return %arg0, %c0_i32, %c0_i32_0 : i32, i32, i32
  }
  func.func @transform_3(%arg0: i32, %arg1: i32) -> (i32, i32, i32) {
    %c0_i32 = arith.constant 0 : i32
    %c0_i32_0 = arith.constant 0 : i32
    %c0_i32_1 = arith.constant 0 : i32
    return %arg0, %c0_i32, %c0_i32_0 : i32, i32, i32
  }
}

</mosaic_0001>

<bundles_post_ra>
// kernel: tpu_custom_call.1
= control target key start
LH: loop header
LB: loop body
LE: loop exit
PB: predicated region body
PF: predicated region fallthrough
CT: control target
= control target key end

     0   :  { %s962_s0 = inlined_call_operand.hbm [shape: f32[2,4,16,16], index: 0, kind: input, shape index: {}]   ;;  %s963_s1 = inlined_call_operand.hbm [shape: f32[2,1,16,16], index: 1, kind: input, shape index: {}]   ;;  %s964_s2 = inlined_call_operand.hbm [shape: f32[2,8,16], index: 2, kind: output, shape index: {0}]   ;;  %s965_s3 = inlined_call_operand.hbm [shape: s32[2,8,16], index: 3, kind: output, shape index: {1}]  }
   0x1   :  { %966 = sst [smem:[#allocation14_spill]] %s962_s0 }
   0x2   :  { %9 = vsyncpa [#allocation3], 0 }
   0x3   :  { %11 = vsyncpa [#allocation3 + $0x1], 0 }
   0x4   :  { %12 = vsyncpa [#allocation6], 0 }
   0x5   :  { %14 = vsyncpa [#allocation6 + $0x1], 0 }
   0x6   :  { %15 = vsyncpa [#allocation4], 0 }
   0x7   :  { %17 = vsyncpa [#allocation4 + $0x1], 0 }
   0x8   :  { %18 = vsyncpa [#allocation9], 0 }
   0x9   :  { %20 = vsyncpa [#allocation9 + $0x1], 0  ;;  %s778_s12 = smov 0   ;;  %s780_s13 = smov 0  }
   0xa   :  { %s782_s14 = smov 0   ;;  %s784_s15 = smov 0  }
   0xb   :  { %s786_s16 = smov 0   ;;  %s788_s17 = smov 0  }
   0xc LB: > { %s475_s18 = sadd.s32 4294967295, %s752_s17   ;;  %s476_s19 = sadd.s32 4294967294, %s752_s17   ;;  %s752_s17 = sphi %s788_s17, %s26_s17   ;;  %s748_s16 = sphi %s786_s16, %s977_s16   ;;  %s744_s15 = sphi %s784_s15, %s976_s15   ;;  %s740_s14 = sphi %s782_s14, %s975_s14   ;;  %s736_s13 = sphi %s780_s13, %s974_s13   ;;  %s732_s12 = sphi %s778_s12, %s973_s12  }
   0xd   : > { %s38_s20 = sadd.s32 1, %s748_s16  ;;  %s47_s21 = sadd.s32 1, %s740_s14 }
   0xe   : > { %p40_p0 = scmp.ge.s32.totalorder %s38_s20, 2  ;;  %p54_p1 = scmp.ne.s32.totalorder %s740_s14, %s736_s13 }
   0xf   : > { %p55_p2 = scmp.eq.s32.totalorder %s752_s17, 0  ;;  %p60_p3 = scmp.ne.s32.totalorder %s736_s13, %s732_s12 }
  0x10   : > { %s979_s20 = smov (%p40_p0, %s38_s20), 0  ;;  %p61_p5 = scmp.eq.s32.totalorder %s475_s18, 0 }
  0x11   : > { %p819_p4 = por %p55_p2, %p54_p1  ;;  %s42_s23 = ssub.s32 %s748_s16, %s979_s20 }
  0x12   : > { %p112_p6 = scmp.eq.s32.totalorder %s475_s18, 1  ;;  %p45_p7 = scmp.eq.s32.totalorder %s42_s23, 0 }
  0x13   : > { %p825_p8 = por %p61_p5, %p60_p3  ;;  %p118_p10 = scmp.eq.s32.totalorder %s476_s19, 1 }
  0x14   : > { %p829_p9 = por %p112_p6, %p54_p1  ;;  %p478_p12 = scmp.ge.s32.totalorder %s752_s17, 2 }
  0x15   : > { %s834_s26 = scalar_select %p45_p7, %s740_s14, %s47_s21  }
  0x16   : > { %p836_p11 = por %p118_p10, %p60_p3  ;;  %p520_p13 = scmp.lt.s32.totalorder %s752_s17, 2 }
  0x17   : > { %s843_s28 = sand.u32 1, %s740_s14   ;;  %s496_s30 = sshll.u32 %s748_s16, 6 }
  0x18   : > { %s479_s29 = sshll.u32 %s843_s28, 4  ;;  %s971_s0 = sld [smem:[#allocation14_spill]] }
  0x19   : > { %s168_s7 = scalar_lea.vmem [#allocation2], %s479_s29  ;;  %p852_p0 = pnand %p520_p13, %p819_p4 }
  0x1a   : > { %s178_s8 = sshll.u32 %s168_s7, 4  ;;  %p485_p1 = scmp.ge.s32.totalorder %s752_s17, 1  ;;  %s179_s8 = int_to_ptr.vmem [resolvable:$true] %s178_s8 }
  0x1b   : > { %s165_s11 = scalar_lea.sflag [#allocation3], %s843_s28  ;;  %s754_s18 = smov 128  }
  0x1c   : > { %s755_s19 = smov 8   ;;  %p210_p2 = scmp.lt.s32.totalorder %s752_s17, 3 }
  0x1d   : > { %s497_s21 = sshll.u32 %s748_s16, 4  ;;  %s192_s5 = scalar_lea.vmem [#allocation5], %s479_s29 }
  0x1e   : > { %s175_s6 = scalar_lea.hbm %s971_s0, %s496_s30  ;;  %p211_p3 = pnand %p485_p1, %p210_p2 }
  0x1f   : > { %s176_s9 = sshll.u32 %s175_s6, 4  ;;  %s199_s22 = scalar_lea.hbm %s963_s1, %s497_s21  ;;  %s177_s9 = int_to_ptr.hbm [resolvable:$true] %s176_s9 }
  0x20   : > { %509 = dma.hbm_to_vmem [thread:$0]  (!%p852_p0), %s177_s9, 256, %s179_s8, %s165_s11, %s754_s18, %s754_s18, %s755_s19  }
  0x21   : > { %s200_s4 = sshll.u32 %s199_s22, 4  ;;  %s202_s6 = sshll.u32 %s192_s5, 4  ;;  %s201_s4 = int_to_ptr.hbm [resolvable:$true] %s200_s4  ;;  %s203_s6 = int_to_ptr.vmem [resolvable:$true] %s202_s6 }
  0x22   : > { %s189_s7 = scalar_lea.sflag [#allocation6], %s843_s28  ;;  %214 = sbr.rel (%p211_p3) target bundleno = 72 (0x48), region = 28 }
  0x23   : > { %512 = dma.hbm_to_vmem [thread:$0]  (!%p852_p0), %s201_s4, 256, %s203_s6, %s189_s7, %s754_s18, %s754_s18, %s755_s19  }
  0x24   : > { %s869_s0 = sand.u32 (!%p211_p3), 1, %s736_s13  }
  0x25   : > { %s486_s8 = sshll.u32 (!%p211_p3), %s869_s0, 4  ;;  %s217_s9 = scalar_lea.sflag (!%p211_p3), [#allocation3], %s869_s0 }
  0x26   : > { %s220_s11 = scalar_lea.vmem (!%p211_p3), [#allocation2], %s486_s8 }
  0x27   : > { %715 = dma.done.wait (%p825_p8), %s217_s9, 256  }
  0x28   : > { %717 = vsyncadd (%p825_p8), %s217_s9, 4294967040  ;;  %s227_s28 = scalar_lea.sflag [#allocation6], %s869_s0  ;;  %s230_s29 = scalar_lea.vmem [#allocation5], %s486_s8 }
  0x29   : > { %719 = dma.done.wait (%p825_p8), %s227_s28, 256  }
  0x2a   : > { %721 = vsyncadd (%p825_p8), %s227_s28, 4294967040  ;;  %s488_s10 = sshll.u32 %s869_s0, 3  ;;  %vm270_vm0 = vcmask 130048   ;;  %v756_v0 = vmov 0.0   ;;  %v757_v1 = vmov 0   ;;  %s492_s21 = sshll.u32 %s744_s15, 3 }
  0x2b   : > { %s883_s18 = scalar_lea.vmem [#allocation7], %s488_s10  ;;  %s887_s19 = scalar_lea.vmem [#allocation8], %s488_s10  ;;  %v273_v2 = vld [vmem:[%s220_s11] sm:$0xff]  ;;  %v274_v3 = vld [vmem:[%s220_s11 + $0x8] sm:$0xff] }
  0x2c   : > { %271 = vst.msk [vmem:[%s883_s18] sm:$0xff] %vm270_vm0, %v756_v0  ;;  %v275_v4 = vld [vmem:[%s230_s29] sm:$0xff]  ;;  %v276_v5 = vld [vmem:[%s230_s29 + $0x8] sm:$0xff]  ;;  %s330_s30 = scalar_lea.hbm %s965_s3, %s492_s21  ;;  %s316_s4 = scalar_lea.hbm %s964_s2, %s492_s21 }
  0x2d   : > { %272 = vst.msk [vmem:[%s887_s19] sm:$0xff] %vm270_vm0, %v757_v1  ;;  %vm277_vm1 = vcmp.gt.f32.partialorder %v275_v4, 0.0  ;;  %v279_v6 = vsub.f32 %v273_v2, %v275_v4  ;;  %vm278_vm2 = vcmp.gt.f32.partialorder %v276_v5, 0.0  ;;  %v280_v7 = vsub.f32 %v274_v3, %v276_v5  ;;  %s332_s5 = sshll.u32 %s887_s19, 4  ;;  %s334_s6 = sshll.u32 %s330_s30, 4  ;;  %s333_s5 = int_to_ptr.vmem [resolvable:$true] %s332_s5  ;;  %s335_s6 = int_to_ptr.hbm [resolvable:$true] %s334_s6 }
  0x2e   : > { %v285_v8 = vsel %vm277_vm1, 1, %v757_v1  ;;  %v286_v10 = vsel %vm278_vm2, 1, %v757_v1  ;;  %s318_s7 = sshll.u32 %s883_s18, 4  ;;  %s320_s8 = sshll.u32 %s316_s4, 4  ;;  %s908_s7 = int_to_ptr.vmem [resolvable:$true] %s318_s7  ;;  %s910_s8 = int_to_ptr.hbm [resolvable:$true] %s320_s8 }
  0x2f   : > { %v281_v9 = vand.u32 2147483647, %v279_v6  ;;  %v291_v11 = vsel %vm270_vm0, %v285_v8, 0  ;;  %v282_v12 = vand.u32 2147483647, %v280_v7  ;;  %v292_v13 = vsel %vm270_vm0, %v286_v10, 0 }
  0x30   : > { %v293_v16 = vadd.s32 %v292_v13, %v291_v11  ;;  %s306_s9 = scalar_lea.sflag [#allocation9], %s869_s0  ;;  %s648_s11 = sshra.s32 %s335_s6, 4  ;;  %s649_s11 = int_to_ptr.hbm [resolvable:$true] %s648_s11 }
  0x31   : > { %v283_v15 = vsel %vm277_vm1, %v281_v9, 0.0  ;;  %v284_v17 = vsel %vm278_vm2, %v282_v12, 0.0  ;;  %s650_s28 = scalar_lea.hbm %s649_s11, 8  ;;  %s654_s21 = scalar_lea.hbm %s965_s3, 16 }
  0x32   : > { %v288_v18 = vsel %vm270_vm0, %v283_v15, 0.0  ;;  %v289_v20 = vsel %vm270_vm0, %v284_v17, 0.0  ;;  %p651_p4 = scmp.ne.s32.totalorder %s649_s11, %s650_s28  ;;  %p655_p7 = scmp.lt.s32.totalorder %s649_s11, %s965_s3 }
  0x33   : > { %v294_v19 = vld [vmem:[%s883_s18] sm:$0xff]  ;;  %v290_v22 = vadd.f32 %v289_v20, %v288_v18  ;;  %p656_p8 = scmp.lt.s32.totalorder %s654_s21, %s650_s28 }
  0x34   : > { %v297_v14 = vld [vmem:[%s887_s19] sm:$0xff]  ;;  %p652_p5 = pnand %p651_p4, %p829_p9 }
  0x35   : > { %v298_v21 = vadd.s32 %v297_v14, %v293_v16  ;;  %v295_v23 = vadd.f32 %v294_v19, %v290_v22  ;;  %p657_p10 = por %p656_p8, %p655_p7 }
  0x36   : > { %p653_p6 = pneg %p652_p5 }
  0x37   : > { %299 = vst.msk [vmem:[%s887_s19] sm:$0xff] %vm270_vm0, %v298_v21 }
  0x38   : > { %p658_p13 = pnand %p657_p10, %p653_p6 }
  0x3a   : > { %661 = shalt.err (!%p658_p13)
}
  0x3b   : > { %503 = dma.vmem_to_hbm [thread:$0]  (%p829_p9), %s333_s5, 128, %s335_s6, %s306_s9   ;;  %296 = vst.msk [vmem:[%s883_s18] sm:$0xff] %vm270_vm0, %v295_v23 }
  0x3c   : > { %s301_s19 = scalar_lea.sflag [#allocation4], %s869_s0  ;;  %s676_s30 = sshra.s32 %s910_s8, 4  ;;  %s677_s30 = int_to_ptr.hbm [resolvable:$true] %s676_s30 }
  0x3d   : > { %s678_s15 = scalar_lea.hbm %s677_s30, 8  ;;  %s682_s11 = scalar_lea.hbm %s964_s2, 16 }
  0x3e   : > { %p679_p0 = scmp.ne.s32.totalorder %s677_s30, %s678_s15  ;;  %p683_p3 = scmp.lt.s32.totalorder %s677_s30, %s964_s2 }
  0x3f   : > { %p684_p4 = scmp.lt.s32.totalorder %s682_s11, %s678_s15 }
  0x40   : > { %p680_p1 = pnand %p679_p0, %p829_p9 }
  0x41   : > { %p685_p5 = por %p684_p4, %p683_p3 }
  0x42   : > { %p681_p2 = pneg %p680_p1 }
  0x44   : > { %p686_p6 = pnand %p685_p5, %p681_p2 }
  0x46   : > { %689 = shalt.err (!%p686_p6)
}
  0x47   : > { %502 = dma.vmem_to_hbm [thread:$0]  (%p829_p9), %s908_s7, 128, %s910_s8, %s301_s19  }
  0x48 PF: > { %s346_s0 = sand.u32 1, %s732_s12   ;;  %p514_p7 = pnand %p478_p12, %p836_p11 }
  0x49   : > { %s347_s18 = scalar_lea.sflag [#allocation4], %s346_s0 }
  0x4a   : > { %p515_p8 = pneg %p514_p7 }
  0x4c   : > { %723 = dma.done.wait (%p515_p8), %s347_s18, 128  }
  0x4d   : > { %725 = vsyncadd (%p515_p8), %s347_s18, 4294967168  ;;  %s357_s5 = scalar_lea.sflag [#allocation9], %s346_s0 }
  0x4e   : > { %727 = dma.done.wait (%p515_p8), %s357_s5, 128  }
  0x4f   : > { %729 = vsyncadd (%p515_p8), %s357_s5, 4294967168  ;;  %s26_s17 = sadd.s32 1, %s752_s17   ;;  %s973_s12 = smov %s736_s13 }
  0x50   : > { %p23_p10 = scmp.ge.s32.totalorder %s26_s17, 4   ;;  %s974_s13 = smov %s740_s14 }
  0x51   : > { %s975_s14 = smov %s834_s26  ;;  %s976_s15 = smov %s748_s16 }
  0x52   : > { %s977_s16 = smov %s979_s20  ;;  %25 = sbr.rel (!%p23_p10) target bundleno = 12 (0xc), region = 107 }
  0x57   :  { %363 = vsyncpa [#allocation3], 1 }
  0x58   :  { %365 = vsyncpa [#allocation3 + $0x1], 1 }
  0x59   :  { %366 = vsyncpa [#allocation6], 1 }
  0x5a   :  { %368 = vsyncpa [#allocation6 + $0x1], 1 }
  0x5b   :  { %369 = vsyncpa [#allocation4], 1 }
  0x5c   :  { %371 = vsyncpa [#allocation4 + $0x1], 1 }
  0x5d   :  { %372 = vsyncpa [#allocation9], 1 }
  0x5e   :  { %374 = vsyncpa [#allocation9 + $0x1], 1 }

</bundles_post_ra>
